<compile_context>
chip_gen: v5e
topology: v5e:2x2
jax: 0.10.0
libtpu: 0.0.40
codegen_flags: <defaults>
</compile_context>

<pallas_src>
import functools

import jax
import jax.numpy as jnp
import numpy as np
from jax.experimental import pallas as pl
from jax.experimental.pallas import tpu as pltpu


# --------------------------------------------------------------------------
# Kernel: whole problem in one invocation (grid=()), everything VMEM-resident.
# --------------------------------------------------------------------------
def _gat_kernel(x_ref, w_ref, am_ref, sup_ref, o_ref, *, alpha: float, concat: bool):
    n = sup_ref.shape[0]
    half = n // 2

    # h = x @ W   (single MXU matmul, computed exactly once)
    h = jnp.dot(x_ref[...], w_ref[...], preferred_element_type=jnp.float32)      # [N, F]

    # f1[i] = h[i] . a[:F] ; f2[i] = h[i] . a[F:]  — fused into ONE [N,F]@[F,2] matmul
    f12 = jnp.dot(h, am_ref[...], preferred_element_type=jnp.float32)            # [N, 2]
    f1 = f12[:, 0:1]                                                              # [N, 1]
    f2 = f12[:, 1:2]                                                              # [N, 1]
    g = f1 + f2                                                                   # [N, 1]

    # Closed-form row pairing of the module's cat(dim=0) construction:
    #   i <  N/2 : e[i, j] = g[2i + (j >= N/2)]
    #   i >= N/2 : e[i, j] = f1[(2j) % N] + f2[(2j + 1) % N]   (same for every such i)
    rows = jax.lax.broadcasted_iota(jnp.int32, (n, n), 0)
    cols = jax.lax.broadcasted_iota(jnp.int32, (n, n), 1)

    # g[2i] / g[2i+1] per row via in-register 0/1 selectors (no host constants, no HBM).
    pick_even = (cols == 2 * rows).astype(jnp.float32)        # [i, k] = (k == 2i)
    pick_odd = (cols == 2 * rows + 1).astype(jnp.float32)     # [i, k] = (k == 2i+1)
    ge = jnp.dot(pick_even, g, preferred_element_type=jnp.float32)               # [N, 1]
    go = jnp.dot(pick_odd, g, preferred_element_type=jnp.float32)                # [N, 1]

    # Bottom-half row vector r[j] = f1[(2j) % N] + f2[(2j+1) % N]
    # (mask-multiply + sublane reduce; no integer mod needed since 0 <= j < N).
    tgt = jnp.where(cols < half, 2 * cols, 2 * cols - n)      # (2j) % N
    sel1 = (rows == tgt).astype(jnp.float32)                  # [k, j] = (k == (2j)%N)
    sel2 = (rows == tgt + 1).astype(jnp.float32)              # [k, j] = (k == (2j+1)%N)
    r_row = jnp.sum(sel1 * f1 + sel2 * f2, axis=0, keepdims=True)                # [1, N]

    e = jnp.where(rows < half, jnp.where(cols < half, ge, go), r_row)            # [N, N]

    # LeakyReLU -> adjacency mask -> row softmax (dim=1).
    e = jnp.where(e > 0.0, e, alpha * e)
    e = jnp.where(sup_ref[...] > 0.0, e, -9.0e15)
    # NOTE: rows with no positive support entries become a uniform softmax over
    # -9e15 logits — this intentionally matches the PyTorch reference.
    m = jnp.max(e, axis=-1, keepdims=True)
    p = jnp.exp(e - m)
    attn = p / jnp.sum(p, axis=-1, keepdims=True)
    # TODO(synk): training-mode attention dropout (F.dropout) not implemented;
    #             this is the inference forward (dropout == identity).

    h_out = jnp.dot(attn, h, preferred_element_type=jnp.float32)                 # [N, F]
    if concat:
        # ELU; exp(min(x,0)) - 1 kept (vs expm1) for Mosaic-lowering safety,
        # absolute difference vs jax.nn.elu is ~1e-7 in f32.
        h_out = jnp.where(h_out > 0.0, h_out, jnp.exp(jnp.minimum(h_out, 0.0)) - 1.0)
    o_ref[...] = h_out.astype(o_ref.dtype)


# --------------------------------------------------------------------------
# Wrapper
# --------------------------------------------------------------------------
def gat_forward(x, w, a, support, *, alpha: float, concat: bool = True):
    """x: [N, in_feat], w: [in_feat, out_feat], a: [2*out_feat, 1], support: [N, N]."""
    n, din = x.shape
    f = w.shape[1]
    assert a.shape == (2 * f, 1), a.shape
    assert support.shape == (n, n), support.shape
    assert n % 2 == 0, "closed-form row pairing of the cat(dim=0) view needs even N"

    # [F, 2] with column 0 = a[:F], column 1 = a[F:]  (tiny host-side reshape).
    a_mat = jnp.concatenate([a[:f], a[f:]], axis=1)

    cost = pl.CostEstimate(
        flops=int(2 * n * din * f + 4 * n * f + 2 * n * n * f + 24 * n * n),
        transcendentals=int(n * n + n * f),
        bytes_accessed=int(4 * (n * din + din * f + 2 * f + n * n + n * f)),
    )

    kernel = functools.partial(_gat_kernel, alpha=float(alpha), concat=bool(concat))
    return pl.pallas_call(
        kernel,
        out_shape=jax.ShapeDtypeStruct((n, f), x.dtype),
        in_specs=[pl.BlockSpec(memory_space=pltpu.MemorySpace.VMEM)] * 4,
        out_specs=pl.BlockSpec(memory_space=pltpu.MemorySpace.VMEM),
        cost_estimate=cost,
    )(x, w, a_mat, support)


# --------------------------------------------------------------------------
# Pure-JAX reference that mirrors the PyTorch forward op-for-op.
# --------------------------------------------------------------------------
def gat_ref(x, w, a, support, alpha, concat=True):
    h = x @ w
    n, f = h.shape
    a_input = jnp.concatenate(
        [jnp.repeat(h, n, axis=0), jnp.tile(h, (n, 1))], axis=0
    ).reshape(n, n, 2 * f)                                   # cat along dim 0, as in the module
    e = jnp.squeeze(a_input @ a, -1)
    e = jnp.where(e > 0.0, e, alpha * e)                     # LeakyReLU(alpha)
    e = jnp.where(support > 0.0, e, -9.0e15)
    attn = jax.nn.softmax(e, axis=1)
    h_out = attn @ h                                         # dropout: inference (identity)
    return jax.nn.elu(h_out) if concat else h_out


if __name__ == "__main__":
    # Small shapes consistent with GraphAttentionLayer(in_feat=32, out_feat=16, ...).
    N, in_feat, out_feat = 64, 32, 16
    alpha = 0.2

    key = jax.random.PRNGKey(0)
    kx, kw, ka, ks = jax.random.split(key, 4)

    x = jax.random.normal(kx, (N, in_feat), dtype=jnp.float32)

    gain = 1.414
    bw = gain * float(np.sqrt(6.0 / (in_feat + out_feat)))
    W = jax.random.uniform(kw, (in_feat, out_feat), jnp.float32, -bw, bw)
    ba = gain * float(np.sqrt(6.0 / (2 * out_feat + 1)))
    a = jax.random.uniform(ka, (2 * out_feat, 1), jnp.float32, -ba, ba)

    # Dense adjacency with self-loops so every row has at least one neighbor.
    adj = (jax.random.uniform(ks, (N, N)) > 0.7).astype(jnp.float32)
    support = jnp.maximum(adj, jnp.eye(N, dtype=jnp.float32))

    out = gat_forward(x, W, a, support, alpha=alpha, concat=True)
    out = jax.block_until_ready(out)

    ref = gat_ref(x, W, a, support, alpha, concat=True)
    assert out.shape == (N, out_feat)
    max_err = float(jnp.max(jnp.abs(out - ref)))
    assert jnp.allclose(out, ref, atol=1e-4, rtol=1e-4), f"max abs err = {max_err}"

    print("KERNEL_OK")
</pallas_src>

<mosaic_0001>
module attributes {stable_mosaic.version = 11 : i64} {
  func.func @_gat_kernel(%arg0: memref<64x32xf32, #tpu.memory_space<vmem>>, %arg1: memref<32x16xf32, #tpu.memory_space<vmem>>, %arg2: memref<16x2xf32, #tpu.memory_space<vmem>>, %arg3: memref<64x64xf32, #tpu.memory_space<vmem>>, %arg4: memref<64x16xf32, #tpu.memory_space<vmem>>) attributes {dimension_semantics = [], scalar_prefetch = 0 : i64, scratch_operands = 0 : i64, tpu.core_type = #tpu.core_type<tc>} {
    %c0 = arith.constant 0 : index
    %c0_0 = arith.constant 0 : index
    %0 = vector.load %arg0[%c0, %c0_0] : memref<64x32xf32, #tpu.memory_space<vmem>>, vector<64x32xf32>
    %c0_1 = arith.constant 0 : index
    %c0_2 = arith.constant 0 : index
    %1 = vector.load %arg1[%c0_1, %c0_2] : memref<32x16xf32, #tpu.memory_space<vmem>>, vector<32x16xf32>
    %cst = arith.constant dense<0.000000e+00> : vector<64x16xf32>
    %2 = tpu.matmul %0, %1, %cst {dimension_numbers = #tpu.dot_dimension_numbers<[1], [0], [0], [1], [0, 0, 1, 1], [], []>} : vector<64x32xf32>, vector<32x16xf32>, vector<64x16xf32> -> vector<64x16xf32>
    %c0_3 = arith.constant 0 : index
    %c0_4 = arith.constant 0 : index
    %3 = vector.load %arg2[%c0_3, %c0_4] : memref<16x2xf32, #tpu.memory_space<vmem>>, vector<16x2xf32>
    %cst_5 = arith.constant dense<0.000000e+00> : vector<64x2xf32>
    %4 = tpu.matmul %2, %3, %cst_5 {dimension_numbers = #tpu.dot_dimension_numbers<[1], [0], [0], [1], [0, 0, 1, 1], [], []>} : vector<64x16xf32>, vector<16x2xf32>, vector<64x2xf32> -> vector<64x2xf32>
    %5 = vector.extract_strided_slice %4 {offsets = [0, 0], sizes = [64, 1], strides = [1, 1]} : vector<64x2xf32> to vector<64x1xf32>
    %6 = vector.extract_strided_slice %4 {offsets = [0, 1], sizes = [64, 1], strides = [1, 1]} : vector<64x2xf32> to vector<64x1xf32>
    %7 = arith.addf %5, %6 : vector<64x1xf32>
    %8 = tpu.iota {dimensions = array<i32: 0>} : vector<64x64xi32>
    %9 = tpu.iota {dimensions = array<i32: 1>} : vector<64x64xi32>
    %c2_i32 = arith.constant 2 : i32
    %10 = vector.broadcast %c2_i32 : i32 to vector<64x64xi32>
    %11 = arith.muli %10, %8 : vector<64x64xi32>
    %12 = arith.cmpi eq, %9, %11 : vector<64x64xi32>
    %13 = arith.extui %12 : vector<64x64xi1> to vector<64x64xi32>
    %14 = arith.sitofp %13 : vector<64x64xi32> to vector<64x64xf32>
    %c2_i32_6 = arith.constant 2 : i32
    %15 = vector.broadcast %c2_i32_6 : i32 to vector<64x64xi32>
    %16 = arith.muli %15, %8 : vector<64x64xi32>
    %c1_i32 = arith.constant 1 : i32
    %17 = vector.broadcast %c1_i32 : i32 to vector<64x64xi32>
    %18 = arith.addi %16, %17 : vector<64x64xi32>
    %19 = arith.cmpi eq, %9, %18 : vector<64x64xi32>
    %20 = arith.extui %19 : vector<64x64xi1> to vector<64x64xi32>
    %21 = arith.sitofp %20 : vector<64x64xi32> to vector<64x64xf32>
    %cst_7 = arith.constant dense<0.000000e+00> : vector<64x1xf32>
    %22 = tpu.matmul %14, %7, %cst_7 {dimension_numbers = #tpu.dot_dimension_numbers<[1], [0], [0], [1], [0, 0, 1, 1], [], []>} : vector<64x64xf32>, vector<64x1xf32>, vector<64x1xf32> -> vector<64x1xf32>
    %cst_8 = arith.constant dense<0.000000e+00> : vector<64x1xf32>
    %23 = tpu.matmul %21, %7, %cst_8 {dimension_numbers = #tpu.dot_dimension_numbers<[1], [0], [0], [1], [0, 0, 1, 1], [], []>} : vector<64x64xf32>, vector<64x1xf32>, vector<64x1xf32> -> vector<64x1xf32>
    %c32_i32 = arith.constant 32 : i32
    %24 = vector.broadcast %c32_i32 : i32 to vector<64x64xi32>
    %25 = arith.cmpi slt, %9, %24 : vector<64x64xi32>
    %c2_i32_9 = arith.constant 2 : i32
    %26 = vector.broadcast %c2_i32_9 : i32 to vector<64x64xi32>
    %27 = arith.muli %26, %9 : vector<64x64xi32>
    %c2_i32_10 = arith.constant 2 : i32
    %28 = vector.broadcast %c2_i32_10 : i32 to vector<64x64xi32>
    %29 = arith.muli %28, %9 : vector<64x64xi32>
    %c64_i32 = arith.constant 64 : i32
    %30 = vector.broadcast %c64_i32 : i32 to vector<64x64xi32>
    %31 = arith.subi %29, %30 : vector<64x64xi32>
    %32 = arith.select %25, %27, %31 : vector<64x64xi1>, vector<64x64xi32>
    %33 = arith.cmpi eq, %8, %32 : vector<64x64xi32>
    %34 = arith.extui %33 : vector<64x64xi1> to vector<64x64xi32>
    %35 = arith.sitofp %34 : vector<64x64xi32> to vector<64x64xf32>
    %c1_i32_11 = arith.constant 1 : i32
    %36 = vector.broadcast %c1_i32_11 : i32 to vector<64x64xi32>
    %37 = arith.addi %32, %36 : vector<64x64xi32>
    %38 = arith.cmpi eq, %8, %37 : vector<64x64xi32>
    %39 = arith.extui %38 : vector<64x64xi1> to vector<64x64xi32>
    %40 = arith.sitofp %39 : vector<64x64xi32> to vector<64x64xf32>
    %41 = vector.broadcast %5 : vector<64x1xf32> to vector<64x64xf32>
    %42 = arith.mulf %35, %41 : vector<64x64xf32>
    %43 = vector.broadcast %6 : vector<64x1xf32> to vector<64x64xf32>
    %44 = arith.mulf %40, %43 : vector<64x64xf32>
    %45 = arith.addf %42, %44 : vector<64x64xf32>
    %cst_12 = arith.constant dense<0.000000e+00> : vector<64xf32>
    %46 = vector.multi_reduction <add>, %45, %cst_12 [0] : vector<64x64xf32> to vector<64xf32>
    %47 = vector.shape_cast %46 : vector<64xf32> to vector<1x64xf32>
    %c32_i32_13 = arith.constant 32 : i32
    %48 = vector.broadcast %c32_i32_13 : i32 to vector<64x64xi32>
    %49 = arith.cmpi slt, %8, %48 : vector<64x64xi32>
    %c32_i32_14 = arith.constant 32 : i32
    %50 = vector.broadcast %c32_i32_14 : i32 to vector<64x64xi32>
    %51 = arith.cmpi slt, %9, %50 : vector<64x64xi32>
    %52 = vector.shape_cast %22 : vector<64x1xf32> to vector<64x1xf32>
    %53 = vector.broadcast %52 : vector<64x1xf32> to vector<64x64xf32>
    %54 = vector.shape_cast %23 : vector<64x1xf32> to vector<64x1xf32>
    %55 = vector.broadcast %54 : vector<64x1xf32> to vector<64x64xf32>
    %56 = arith.select %51, %53, %55 : vector<64x64xi1>, vector<64x64xf32>
    %57 = vector.shape_cast %47 : vector<1x64xf32> to vector<1x64xf32>
    %58 = vector.broadcast %57 : vector<1x64xf32> to vector<64x64xf32>
    %59 = arith.select %49, %56, %58 : vector<64x64xi1>, vector<64x64xf32>
    %cst_15 = arith.constant 0.000000e+00 : f32
    %60 = vector.broadcast %cst_15 : f32 to vector<64x64xf32>
    %61 = arith.cmpf ogt, %59, %60 : vector<64x64xf32>
    %cst_16 = arith.constant 2.000000e-01 : f32
    %62 = vector.broadcast %cst_16 : f32 to vector<64x64xf32>
    %63 = arith.mulf %62, %59 : vector<64x64xf32>
    %64 = arith.select %61, %59, %63 : vector<64x64xi1>, vector<64x64xf32>
    %c0_17 = arith.constant 0 : index
    %c0_18 = arith.constant 0 : index
    %65 = vector.load %arg3[%c0_17, %c0_18] : memref<64x64xf32, #tpu.memory_space<vmem>>, vector<64x64xf32>
    %cst_19 = arith.constant 0.000000e+00 : f32
    %66 = vector.broadcast %cst_19 : f32 to vector<64x64xf32>
    %67 = arith.cmpf ogt, %65, %66 : vector<64x64xf32>
    %cst_20 = arith.constant -9.000000e+15 : f32
    %68 = vector.broadcast %cst_20 : f32 to vector<64x64xf32>
    %69 = arith.select %67, %64, %68 : vector<64x64xi1>, vector<64x64xf32>
    %cst_21 = arith.constant dense<0xFF800000> : vector<64xf32>
    %70 = vector.multi_reduction <maximumf>, %69, %cst_21 [1] : vector<64x64xf32> to vector<64xf32>
    %71 = vector.shape_cast %70 : vector<64xf32> to vector<64x1xf32>
    %72 = vector.broadcast %71 : vector<64x1xf32> to vector<64x64xf32>
    %73 = arith.subf %69, %72 : vector<64x64xf32>
    %74 = math.exp %73 : vector<64x64xf32>
    %cst_22 = arith.constant dense<0.000000e+00> : vector<64xf32>
    %75 = vector.multi_reduction <add>, %74, %cst_22 [1] : vector<64x64xf32> to vector<64xf32>
    %76 = vector.shape_cast %75 : vector<64xf32> to vector<64x1xf32>
    %77 = vector.broadcast %76 : vector<64x1xf32> to vector<64x64xf32>
    %78 = arith.divf %74, %77 : vector<64x64xf32>
    %cst_23 = arith.constant dense<0.000000e+00> : vector<64x16xf32>
    %79 = tpu.matmul %78, %2, %cst_23 {dimension_numbers = #tpu.dot_dimension_numbers<[1], [0], [0], [1], [0, 0, 1, 1], [], []>} : vector<64x64xf32>, vector<64x16xf32>, vector<64x16xf32> -> vector<64x16xf32>
    %cst_24 = arith.constant 0.000000e+00 : f32
    %80 = vector.broadcast %cst_24 : f32 to vector<64x16xf32>
    %81 = arith.cmpf ogt, %79, %80 : vector<64x16xf32>
    %cst_25 = arith.constant 0.000000e+00 : f32
    %82 = vector.broadcast %cst_25 : f32 to vector<64x16xf32>
    %83 = arith.minimumf %79, %82 : vector<64x16xf32>
    %84 = math.exp %83 : vector<64x16xf32>
    %cst_26 = arith.constant 1.000000e+00 : f32
    %85 = vector.broadcast %cst_26 : f32 to vector<64x16xf32>
    %86 = arith.subf %84, %85 : vector<64x16xf32>
    %87 = arith.select %81, %79, %86 : vector<64x16xi1>, vector<64x16xf32>
    %c0_27 = arith.constant 0 : index
    %c0_28 = arith.constant 0 : index
    %88 = vector.load %arg4[%c0_27, %c0_28] : memref<64x16xf32, #tpu.memory_space<vmem>>, vector<64x16xf32>
    tpu.vector_store %arg4[%c0_27, %c0_28], %87 {strides = array<i32>} : memref<64x16xf32, #tpu.memory_space<vmem>>, vector<64x16xf32>,
    return
  }
}

</mosaic_0001>

<bundles_post_ra>
// kernel: tpu_custom_call.1
= control target key start
LH: loop header
LB: loop body
LE: loop exit
PB: predicated region body
PF: predicated region fallthrough
CT: control target
= control target key end

     0   :  { %vm29_vm0 = vcmask 261120   ;;  %vm97_vm1 = vcmask 130048   ;;  %v1193_v22 = vmov 0   ;;  %v1194_v24 = vmov 1   ;;  %s1640_s1 = inlined_call_operand.vmem [shape: f32[32,16], index: 1, kind: input, shape index: {}]   ;;  %s1641_s0 = inlined_call_operand.vmem [shape: f32[64,32], index: 0, kind: input, shape index: {}]   ;;  %s1642_s2 = inlined_call_operand.vmem [shape: f32[16,2], index: 2, kind: input, shape index: {}]   ;;  %s1643_s3 = inlined_call_operand.vmem [shape: f32[64,64], index: 3, kind: input, shape index: {}]   ;;  %s1644_s4 = inlined_call_operand.vmem [shape: f32[64,16], index: 4, kind: output, shape index: {}]  }
   0x1   :  { %v28_v0 = vld [vmem:[%s1640_s1 + $0x18] sm:$0xff]  ;;  %v27_v1 = vld [vmem:[%s1640_s1 + $0x10] sm:$0xff]  ;;  %v26_v2 = vld [vmem:[%s1640_s1 + $0x8] sm:$0xff]  ;;  %1132 = vset.pattern.permute.xlu2 %v1193_v22  ;;  %1131 = vset.pattern.permute.xlu1 %v1193_v22  ;;  %v203_v36 = vlaneseq  ;;  %v1196_v55 = vmov 0.0   ;;  %vm278_vm4 = vcmask 523264  }
   0x2   :  { %66 = vmatpush.msra.mxu0 %v28_v0  ;;  %v25_v3 = vld [vmem:[%s1640_s1] sm:$0xff]  ;;  %v18_v5 = vld [vmem:[%s1641_s0 + $0x8] sm:$0xff]  ;;  %v19_v6 = vld [vmem:[%s1641_s0 + $0x10] sm:$0xff]  ;;  %1136 = vset.pattern.permute.xlu0 %v1194_v24 }
   0x3   :  { %v17_v4 = vld [vmem:[%s1641_s0] sm:$0xff]  ;;  %v20_v7 = vld [vmem:[%s1641_s0 + $0x18] sm:$0xff]  ;;  %v96_v8 = vld [vmem:[%s1642_s2 + $0x8] sm:$0xff]  ;;  %v1312_v37 = vshrl.u32 %v203_v36, 7  ;;  %v1318_v48 = vand.u32 127, %v203_v36 }
   0x4   :  { %67 = vmatpush.msra.mxu0 %v27_v1  ;;  %1121 = vmatpush.msra.mxu1 %v96_v8  ;;  %v21_v9 = vld [vmem:[%s1641_s0 + $0x20] sm:$0xff]  ;;  %v22_v10 = vld [vmem:[%s1641_s0 + $0x28] sm:$0xff]  ;;  %v23_v11 = vld [vmem:[%s1641_s0 + $0x30] sm:$0xff] }
   0x5   :  { %1122 = vmatpush.msra.mxu2 %v96_v8  ;;  %1123 = vmatpush.msra.mxu3 %v96_v8  ;;  %v24_v12 = vld [vmem:[%s1641_s0 + $0x38] sm:$0xff]  ;;  %v95_v13 = vld [vmem:[%s1642_s2] sm:$0xff]  ;;  %s1195_s0 = smov 127   ;;  %v214_v41 = vmul.u32 2, %v1312_v37  ;;  %v1316_v47 = vadd.s32 8, %v1312_v37  ;;  %v1331_v59 = vadd.s32 16, %v1312_v37 }
   0x6   :  { %68 = vmatpush.msra.mxu0 %v26_v2  ;;  %1124 = vmatpush.msra.mxu1 %v95_v13  ;;  %v1339_v0 = vadd.s32 24, %v1312_v37  ;;  %vm409_vm11 = vcmp.lt.s32.totalorder %v1318_v48, 32 }
   0x7   :  { %1125 = vmatpush.msra.mxu2 %v95_v13  ;;  %1126 = vmatpush.msra.mxu3 %v95_v13  ;;  %v246_v45 = vadd.s32 1, %v214_v41  ;;  %vm222_vm2 = vcmp.eq.s32.totalorder %v1318_v48, %v214_v41  ;;  %v215_v52 = vmul.u32 2, %v1316_v47  ;;  %v216_v60 = vmul.u32 2, %v1331_v59 }
   0x8   :  { %69 = vmatpush.msra.mxu0 %v25_v3  ;;  %v1056_v56 = vsel %vm222_vm2, 1.0, %v1196_v55  ;;  %v217_v1 = vmul.u32 2, %v1339_v0 }
   0x9   :  { %1040 = vmatmul.msk.f32.vlgmr.msra.gmra.mxu0 %vm29_vm0, %v17_v4  ;;  %vm254_vm3 = vcmp.eq.s32.totalorder %v1318_v48, %v246_v45  ;;  %v247_v58 = vadd.s32 1, %v215_v52  ;;  %vm223_vm5 = vcmp.eq.s32.totalorder %v1318_v48, %v215_v52  ;;  %v248_v63 = vadd.s32 1, %v216_v60 }
   0xa   :  { %136 = vmatpush.msrb.mxu0 %v96_v8  ;;  %v1064_v57 = vsel %vm254_vm3, 1.0, %v1196_v55  ;;  %v1057_v61 = vsel %vm223_vm5, 1.0, %v1196_v55  ;;  %vm224_vm7 = vcmp.eq.s32.totalorder %v1318_v48, %v216_v60  ;;  %v249_v4 = vadd.s32 1, %v217_v1 }
   0xb   :  { %vm255_vm6 = vcmp.eq.s32.totalorder %v1318_v48, %v247_v58  ;;  %vm256_vm8 = vcmp.eq.s32.totalorder %v1318_v48, %v248_v63  ;;  %v1058_v2 = vsel %vm224_vm7, 1.0, %v1196_v55  ;;  %vm225_vm9 = vcmp.eq.s32.totalorder %v1318_v48, %v217_v1 }
   0xc   :  { %137 = vmatpush.msrb.mxu0 %v95_v13  ;;  %v1065_v62 = vsel %vm255_vm6, 1.0, %v1196_v55  ;;  %v1066_v3 = vsel %vm256_vm8, 1.0, %v1196_v55  ;;  %vm257_vm10 = vcmp.eq.s32.totalorder %v1318_v48, %v249_v4  ;;  %v1405_v52 = vadd.s32 48, %v1312_v37 }
  0x11   :  { %1041 = vmatmul.msk.f32.gmra.mxu0 %vm29_vm0, %v18_v5  ;;  %v1059_v5 = vsel %vm225_vm9, 1.0, %v1196_v55 }
  0x19   :  { %1042 = vmatmul.msk.f32.gmra.mxu0 %vm29_vm0, %v19_v6  ;;  %v1067_v6 = vsel %vm257_vm10, 1.0, %v1196_v55 }
  0x21   :  { %1043 = vmatmul.msk.f32.gmra.mxu0 %vm29_vm0, %v20_v7 }
  0x29   :  { %1044 = vmatmul.msk.f32.gmra.mxu0 %vm29_vm0, %v21_v9 }
  0x31   :  { %1045 = vmatmul.msk.f32.gmra.mxu0 %vm29_vm0, %v22_v10 }
  0x39   :  { %1046 = vmatmul.msk.f32.gmra.mxu0 %vm29_vm0, %v23_v11 }
  0x41   :  { %1047 = vmatmul.msk.f32.gmra.mxu0 %vm29_vm0, %v24_v12 }
  0x86   :  { %v71_v14 = vpop.f32.mrf.mxu0 }
  0x87   :  { %1048 = vmatmul.msk.f32.vlgmr.msrb.gmra.mxu0 %vm97_vm1, %v71_v14 }
  0x8e   :  { %v74_v15 = vpop.f32.mrf.mxu0 }
  0x8f   :  { %1049 = vmatmul.msk.f32.gmra.mxu0 %vm97_vm1, %v74_v15 }
  0x96   :  { %v77_v16 = vpop.f32.mrf.mxu0 }
  0x97   :  { %1050 = vmatmul.msk.f32.vlgmr.msra.gmra.mxu1 %vm97_vm1, %v77_v16 }
  0x9e   :  { %v80_v17 = vpop.f32.mrf.mxu0 }
  0x9f   :  { %1051 = vmatmul.msk.f32.gmra.mxu1 %vm97_vm1, %v80_v17 }
  0xa6   :  { %v83_v18 = vpop.f32.mrf.mxu0 }
  0xa7   :  { %1052 = vmatmul.msk.f32.vlgmr.msra.gmra.mxu2 %vm97_vm1, %v83_v18 }
  0xae   :  { %v86_v19 = vpop.f32.mrf.mxu0 }
  0xaf   :  { %1053 = vmatmul.msk.f32.gmra.mxu2 %vm97_vm1, %v86_v19 }
  0xb6   :  { %v89_v20 = vpop.f32.mrf.mxu0 }
  0xb7   :  { %1054 = vmatmul.msk.f32.gmra.mxu2 %vm97_vm1, %v89_v20 }
  0xbe   :  { %v92_v21 = vpop.f32.mrf.mxu0 }
  0xbf   :  { %1055 = vmatmul.msk.f32.vlgmr.msra.gmra.mxu3 %vm97_vm1, %v92_v21  ;;  %947 = vmatpush.msrb.mxu1 %v92_v21 }
  0xc1   :  { %948 = vmatpush.msrb.mxu1 %v89_v20 }
  0xc3   :  { %949 = vmatpush.msrb.mxu1 %v86_v19 }
  0xc5   :  { %950 = vmatpush.msrb.mxu1 %v83_v18 }
  0xc7   :  { %951 = vmatpush.msrb.mxu1 %v80_v17 }
  0xc9   :  { %952 = vmatpush.msrb.mxu1 %v77_v16 }
  0xcb   :  { %953 = vmatpush.msrb.mxu1 %v74_v15 }
  0xcd   :  { %954 = vmatpush.msrb.mxu1 %v71_v14 }
 0x104   :  { %v1285_v26 = vpop.f32.mrf.mxu0 }
 0x10c   :  { %v1288_v28 = vpop.f32.mrf.mxu0 }
 0x114   :  { %v1282_v23 = vpop.f32.mrf.mxu1 }
 0x11c   :  { %v148_v25 = vpop.f32.mrf.mxu1 }
 0x11d   :  { %177 = vrot.lane.b32.xlu2 %v148_v25, %s1195_s0 }
 0x125   :  { %175 = vrot.lane.b32.xlu2 %v1282_v23, %s1195_s0 }
 0x12a   :  { %v151_v27 = vpop.f32.mrf.mxu2 }
 0x12d   :  { %467 = vperm.xlu2 %1132, %v1288_v28  }
 0x132   :  { %v154_v29 = vpop.f32.mrf.mxu2 }
 0x133   :  { %181 = vrot.lane.b32.xlu1 %v154_v29, %s1195_s0 }
 0x135   :  { %1134 = vset.pattern.permute.xlu2 %v1194_v24 }
 0x136   :  { %507 = vperm.xlu2 %1134, %v1288_v28  }
 0x13a   :  { %v157_v31 = vpop.f32.mrf.mxu2 }
 0x13b   :  { %179 = vrot.lane.b32.xlu1 %v151_v27, %s1195_s0 }
 0x13e   :  { %1135 = vset.pattern.permute.xlu2 %v1193_v22 }
 0x13f   :  { %475 = vperm.xlu2 %1135, %v148_v25  }
 0x142   :  { %v1294_v30 = vpop.f32.mrf.mxu3 }
 0x143   :  { %185 = vrot.lane.b32.xlu0 %v1294_v30, %s1195_s0  ;;  %171 = vrot.lane.b32.xlu1 %v1285_v26, %s1195_s0 }
 0x147   :  { %1139 = vset.pattern.permute.xlu2 %v1194_v24 }
 0x148   :  { %519 = vperm.xlu2 %1139, %v151_v27  }
 0x14b   :  { %183 = vrot.lane.b32.xlu0 %v157_v31, %s1195_s0  ;;  %463 = vperm.xlu1 %1131, %v1285_v26  }
 0x150   :  { %1141 = vset.pattern.permute.xlu2 %v1193_v22 }
 0x151   :  { %487 = vperm.xlu2 %1141, %v157_v31  }
 0x153   :  { %1133 = vset.pattern.permute.xlu1 %v1194_v24  ;;  %173 = vrot.lane.b32.xlu0 %v1288_v28, %s1195_s0 }
 0x154   :  { %503 = vperm.xlu1 %1133, %v1285_v26  }
 0x159   :  { %491 = vperm.xlu2 %1141, %v1294_v30  }
 0x15b   :  { %515 = vperm.xlu0 %1136, %v148_v25  }
 0x15c   :  { %511 = vperm.xlu1 %1133, %v1282_v23  }
 0x163   :  { %1137 = vset.pattern.permute.xlu0 %v1193_v22 }
 0x164   :  { %1138 = vset.pattern.permute.xlu1 %v1193_v22  ;;  %471 = vperm.xlu0 %1137, %v1282_v23  }
 0x165   :  { %479 = vperm.xlu1 %1138, %v151_v27  }
 0x16c   :  { %483 = vperm.xlu0 %1137, %v154_v29  }
 0x16d   :  { %1140 = vset.pattern.permute.xlu1 %v1194_v24 }
 0x16e   :  { %523 = vperm.xlu1 %1140, %v154_v29  }
 0x176   :  { %527 = vperm.xlu1 %1140, %v157_v31  }
 0x177   :  { %v178_v35 = vpop.permute.xlu2 %177 }
 0x178   :  { %v198_v46 = vadd.f32 %v178_v35, %v148_v25 }
 0x17e   :  { %1143 = vset.pattern.permute.xlu1 %v1193_v22 }
 0x17f   :  { %v176_v44 = vpop.permute.xlu2 %175 }
 0x180   :  { %v197_v50 = vadd.f32 %v176_v44, %v1282_v23  ;;  %v410_v23 = vmul.u32 2, %v1318_v48  ;;  %v1400_v44 = vadd.s32 40, %v1312_v37 }
 0x182   :  { %v1088_v25 = vadd.s32 4294967232, %v410_v23 }
 0x187   :  { %v468_v15 = vpop.permute.xlu2 %467 }
 0x190   :  { %v508_v16 = vpop.permute.xlu2 %507 }
 0x199   :  { %v476_v18 = vpop.permute.xlu2 %475 }
 0x1a2   :  { %v1359_v20 = vpop.permute.xlu2 %519 }
 0x1a5   :  { %v182_v32 = vpop.permute.xlu1 %181 }
 0x1a6   :  { %v200_v42 = vadd.f32 %v182_v32, %v154_v29 }
 0x1ad   :  { %v180_v38 = vpop.permute.xlu1 %179 }
 0x1ae   :  { %v199_v43 = vadd.f32 %v180_v38, %v151_v27 }
 0x1b5   :  { %v186_v33 = vpop.permute.xlu0 %185  ;;  %v172_v51 = vpop.permute.xlu1 %171 }
 0x1b6   :  { %v202_v34 = vadd.f32 %v186_v33, %v1294_v30  ;;  %v195_v54 = vadd.f32 %v172_v51, %v1285_v26  ;;  %v1363_v26 = vpop.permute.xlu2 %487 }
 0x1b8   :  { %311 = vmatpush.msrb.mxu2 %v202_v34  ;;  %376 = vmatpush.msrb.mxu3 %v202_v34 }
 0x1bd   :  { %v184_v39 = vpop.permute.xlu0 %183  ;;  %v464_v17 = vpop.permute.xlu1 %463 }
 0x1be   :  { %v201_v40 = vadd.f32 %v184_v39, %v157_v31  ;;  %v1386_v32 = vpop.permute.xlu2 %491 }
 0x1c0   :  { %312 = vmatpush.msrb.mxu2 %v201_v40  ;;  %377 = vmatpush.msrb.mxu3 %v201_v40 }
 0x1c2   :  { %313 = vmatpush.msrb.mxu2 %v200_v42  ;;  %378 = vmatpush.msrb.mxu3 %v200_v42 }
 0x1c4   :  { %314 = vmatpush.msrb.mxu2 %v199_v43  ;;  %379 = vmatpush.msrb.mxu3 %v199_v43  ;;  %v1397_v43 = vadd.s32 32, %v1312_v37 }
 0x1c5   :  { %v174_v49 = vpop.permute.xlu0 %173 }
 0x1c6   :  { %315 = vmatpush.msrb.mxu2 %v198_v46  ;;  %380 = vmatpush.msrb.mxu3 %v198_v46  ;;  %v196_v53 = vadd.f32 %v174_v49, %v1288_v28  ;;  %v504_v19 = vpop.permute.xlu1 %503 }
 0x1c8   :  { %316 = vmatpush.msrb.mxu2 %v197_v50  ;;  %381 = vmatpush.msrb.mxu3 %v197_v50 }
 0x1ca   :  { %317 = vmatpush.msrb.mxu2 %v196_v53  ;;  %382 = vmatpush.msrb.mxu3 %v196_v53 }
 0x1cc   :  { %318 = vmatpush.msrb.mxu2 %v195_v54  ;;  %383 = vmatpush.msrb.mxu3 %v195_v54 }
 0x1cd   :  { %1072 = vmatmul.msk.f32.vlgmr.msrb.gmra.mxu2 %vm278_vm4, %v1056_v56  ;;  %1080 = vmatmul.msk.f32.vlgmr.msrb.gmra.mxu3 %vm278_vm4, %v1064_v57 }
 0x1ce   :  { %v512_v21 = vpop.permute.xlu1 %511 }
 0x1d5   :  { %1073 = vmatmul.msk.f32.gmra.mxu2 %vm278_vm4, %v1057_v61  ;;  %1081 = vmatmul.msk.f32.gmra.mxu3 %vm278_vm4, %v1065_v62 }
 0x1d7   :  { %v480_v27 = vpop.permute.xlu1 %479 }
 0x1dd   :  { %1074 = vmatmul.msk.f32.gmra.mxu2 %vm278_vm4, %v1058_v2  ;;  %1082 = vmatmul.msk.f32.gmra.mxu3 %vm278_vm4, %v1066_v3  ;;  %v1427_v2 = vadd.s32 56, %v1312_v37 }
 0x1e0   :  { %v524_v39 = vpop.permute.xlu1 %523 }
 0x1e5   :  { %1075 = vmatmul.msk.f32.gmra.mxu2 %vm278_vm4, %v1059_v5  ;;  %1083 = vmatmul.msk.f32.gmra.mxu3 %vm278_vm4, %v1067_v6 }
 0x1e8   :  { %v528_v6 = vpop.permute.xlu1 %527 }
 0x250   :  { %v320_v7 = vpop.f32.mrf.mxu2  ;;  %v385_v8 = vpop.f32.mrf.mxu3 }
 0x251   :  { %621 = vperm.xlu0 %1137, %v385_v8   ;;  %581 = vperm.xlu2 %1141, %v320_v7   ;;  %v699_v7 = vld [vmem:[%s1643_s3] sm:$0xff] }
 0x258   :  { %v323_v9 = vpop.f32.mrf.mxu2  ;;  %v388_v10 = vpop.f32.mrf.mxu3 }
 0x259   :  { %1142 = vset.pattern.permute.xlu0 %v1194_v24  ;;  %626 = vperm.xlu2 %1141, %v388_v10   ;;  %v516_v24 = vpop.permute.xlu0 %515 }
 0x25a   :  { %586 = vperm.xlu1 %1143, %v323_v9   ;;  %531 = vperm.xlu0 %1142, %v1294_v30  }
 0x260   :  { %v326_v11 = vpop.f32.mrf.mxu2  ;;  %v391_v12 = vpop.f32.mrf.mxu3 }
 0x261   :  { %631 = vperm.xlu2 %1141, %v391_v12   ;;  %v472_v29 = vpop.permute.xlu0 %471 }
 0x262   :  { %591 = vperm.xlu1 %1143, %v326_v11   ;;  %1144 = vset.pattern.permute.xlu0 %v1193_v22  ;;  %v1367_v22 = vsel %vm409_vm11, %v410_v23, %v1088_v25 }
 0x263   :  { %v1370_v28 = vadd.s32 1, %v1367_v22  ;;  %vm413_vm14 = vcmp.eq.s32.totalorder %v1312_v37, %v1367_v22  ;;  %vm415_vm15 = vcmp.eq.s32.totalorder %v1331_v59, %v1367_v22  ;;  %vm414_vm0 = vcmp.eq.s32.totalorder %v1316_v47, %v1367_v22 }
 0x264   :  { %v1089_v33 = vsel %vm413_vm14, 1.0, %v1196_v55  ;;  %v1091_v34 = vsel %vm415_vm15, 1.0, %v1196_v55  ;;  %v1090_v36 = vsel %vm414_vm0, 1.0, %v1196_v55  ;;  %vm416_vm5 = vcmp.eq.s32.totalorder %v1339_v0, %v1367_v22 }
 0x265   :  { %vm438_vm12 = vcmp.eq.s32.totalorder %v1312_v37, %v1370_v28  ;;  %vm439_vm13 = vcmp.eq.s32.totalorder %v1316_v47, %v1370_v28  ;;  %vm440_vm2 = vcmp.eq.s32.totalorder %v1331_v59, %v1370_v28  ;;  %vm441_vm3 = vcmp.eq.s32.totalorder %v1339_v0, %v1370_v28 }
 0x266   :  { %v1097_v30 = vsel %vm438_vm12, 1.0, %v1196_v55  ;;  %v1098_v31 = vsel %vm439_vm13, 1.0, %v1196_v55  ;;  %v1099_v38 = vsel %vm440_vm2, 1.0, %v1196_v55  ;;  %v494_v41 = vmul.f32 %v1089_v33, %v464_v17 }
 0x267   :  { %v534_v35 = vmul.f32 %v1097_v30, %v504_v19  ;;  %v535_v40 = vmul.f32 %v1098_v31, %v508_v16  ;;  %v496_v42 = vmul.f32 %v1091_v34, %v472_v29  ;;  %v495_v45 = vmul.f32 %v1090_v36, %v468_v15 }
 0x268   :  { %v329_v13 = vpop.f32.mrf.mxu2  ;;  %v394_v14 = vpop.f32.mrf.mxu3  ;;  %v1100_v47 = vsel %vm441_vm3, 1.0, %v1196_v55  ;;  %v536_v49 = vmul.f32 %v1099_v38, %v512_v21  ;;  %v1092_v51 = vsel %vm416_vm5, 1.0, %v1196_v55  ;;  %vm417_vm6 = vcmp.eq.s32.totalorder %v1397_v43, %v1367_v22 }
 0x269   :  { %636 = vperm.xlu2 %1141, %v394_v14   ;;  %v542_v46 = vadd.f32 %v534_v35, %v494_v41  ;;  %v484_v50 = vpop.permute.xlu0 %483  ;;  %v543_v53 = vadd.f32 %v535_v40, %v495_v45  ;;  %vm443_vm7 = vcmp.eq.s32.totalorder %v1400_v44, %v1370_v28  ;;  %vm442_vm8 = vcmp.eq.s32.totalorder %v1397_v43, %v1370_v28 }
 0x26a   :  { %596 = vperm.xlu1 %1143, %v329_v13   ;;  %v544_v54 = vadd.f32 %v536_v49, %v496_v42  ;;  %v537_v56 = vmul.f32 %v1100_v47, %v516_v24  ;;  %vm418_vm9 = vcmp.eq.s32.totalorder %v1400_v44, %v1367_v22  ;;  %vm444_vm10 = vcmp.eq.s32.totalorder %v1405_v52, %v1370_v28 }
 0x26b   :  { %v550_v58 = vsel %vm278_vm4, %v542_v46, 0.0  ;;  %v497_v59 = vmul.f32 %v1092_v51, %v476_v18  ;;  %vm419_vm12 = vcmp.eq.s32.totalorder %v1405_v52, %v1367_v22  ;;  %v1093_v60 = vsel %vm417_vm6, 1.0, %v1196_v55 }
 0x26c   :  { %v1102_v61 = vsel %vm443_vm7, 1.0, %v1196_v55  ;;  %v551_v62 = vsel %vm278_vm4, %v543_v53, 0.0  ;;  %v1101_v63 = vsel %vm442_vm8, 1.0, %v1196_v55  ;;  %v553_v0 = vsel %vm278_vm4, %v544_v54, 0.0  ;;  %v701_v54 = vld [vmem:[%s1643_s3 + $0x10] sm:$0xff] }
 0x26d   :  { %v1094_v1 = vsel %vm418_vm9, 1.0, %v1196_v55  ;;  %v552_v3 = vadd.f32 %v551_v62, %v550_v58  ;;  %v545_v4 = vadd.f32 %v537_v56, %v497_v59  ;;  %v1103_v5 = vsel %vm444_vm10, 1.0, %v1196_v55 }
 0x26e   :  { %v1095_v8 = vsel %vm419_vm12, 1.0, %v1196_v55  ;;  %v498_v9 = vmul.f32 %v1093_v60, %v480_v27  ;;  %v539_v10 = vmul.f32 %v1102_v61, %v524_v39  ;;  %v538_v12 = vmul.f32 %v1101_v63, %v1359_v20 }
 0x26f   :  { %v554_v13 = vadd.f32 %v553_v0, %v552_v3  ;;  %v499_v14 = vmul.f32 %v1094_v1, %v484_v50  ;;  %v540_v15 = vmul.f32 %v1103_v5, %v528_v6  ;;  %vm707_vm14 = vcmp.gt.f32.partialorder %v699_v7, 0.0  ;;  %v702_v3 = vld [vmem:[%s1643_s3 + $0x18] sm:$0xff]  ;;  %v704_v7 = vld [vmem:[%s1643_s3 + $0x28] sm:$0xff] }
 0x270   :  { %v500_v17 = vmul.f32 %v1095_v8, %v1363_v26  ;;  %vm420_vm15 = vcmp.eq.s32.totalorder %v1427_v2, %v1367_v22  ;;  %v555_v18 = vsel %vm278_vm4, %v545_v4, 0.0  ;;  %v546_v19 = vadd.f32 %v538_v12, %v498_v9  ;;  %v703_v9 = vld [vmem:[%s1643_s3 + $0x20] sm:$0xff] }
 0x271   :  { %v547_v21 = vadd.f32 %v539_v10, %v499_v14  ;;  %vm445_vm0 = vcmp.eq.s32.totalorder %v1427_v2, %v1370_v28  ;;  %v556_v20 = vadd.f32 %v555_v18, %v554_v13  ;;  %v1096_v26 = vsel %vm420_vm15, 1.0, %v1196_v55  ;;  %v700_v28 = vld [vmem:[%s1643_s3 + $0x8] sm:$0xff] }
 0x272   :  { %v548_v27 = vadd.f32 %v540_v15, %v500_v17  ;;  %v1104_v22 = vsel %vm445_vm0, 1.0, %v1196_v55  ;;  %v557_v30 = vsel %vm278_vm4, %v546_v19, 0.0  ;;  %v501_v36 = vmul.f32 %v1096_v26, %v1386_v32  ;;  %v706_v19 = vld [vmem:[%s1643_s3 + $0x38] sm:$0xff] }
 0x273   :  { %v559_v31 = vsel %vm278_vm4, %v547_v21, 0.0  ;;  %v558_v33 = vadd.f32 %v557_v30, %v556_v20  ;;  %vm708_vm3 = vcmp.gt.f32.partialorder %v700_v28, 0.0  ;;  %vm709_vm6 = vcmp.gt.f32.partialorder %v701_v54, 0.0 }
 0x274   :  { %v561_v38 = vsel %vm278_vm4, %v548_v27, 0.0  ;;  %vm710_vm8 = vcmp.gt.f32.partialorder %v702_v3, 0.0  ;;  %vm712_vm9 = vcmp.gt.f32.partialorder %v704_v7, 0.0  ;;  %vm711_vm12 = vcmp.gt.f32.partialorder %v703_v9, 0.0 }
 0x275   :  { %v560_v41 = vadd.f32 %v559_v31, %v558_v33 }
 0x277   :  { %v562_v46 = vadd.f32 %v561_v38, %v560_v41 }
 0x2ab   :  { %v582_v57 = vpop.permute.xlu2 %581 }
 0x2b3   :  { %v627_v24 = vpop.permute.xlu2 %626 }
 0x2bb   :  { %v632_v51 = vpop.permute.xlu2 %631 }
 0x2c3   :  { %v622_v11 = vpop.permute.xlu0 %621  ;;  %v637_v4 = vpop.permute.xlu2 %636 }
 0x2c4   :  { %v659_v37 = vsel %vm409_vm11, %v582_v57, %v622_v11 }
 0x2c5   :  { %vm675_vm13 = vcmp.gt.f32.partialorder %v659_v37, 0.0  ;;  %v683_v16 = vmul.f32 0.2, %v659_v37 }
 0x2c7   :  { %v691_v23 = vsel %vm675_vm13, %v659_v37, %v683_v16  ;;  %v705_v37 = vld [vmem:[%s1643_s3 + $0x30] sm:$0xff]  ;;  %vm714_vm13 = vcmp.gt.f32.partialorder %v706_v19, 0.0 }
 0x2c8   :  { %v1443_v25 = vsel %vm707_vm14, %v691_v23, -9e+15 }
 0x2c9   :  { %v723_v29 = vsel %vm278_vm4, %v1443_v25, -inf }
 0x2ca   :  { %724 = vmax.xlane.f32.xlu0 %v723_v29 }
 0x2cc   :  { %v587_v34 = vpop.permute.xlu1 %586  ;;  %v532_v35 = vpop.permute.xlu0 %531 }
 0x2cd   :  { %v660_v39 = vsel %vm409_vm11, %v587_v34, %v627_v24  ;;  %v541_v40 = vmul.f32 %v1104_v22, %v532_v35 }
 0x2ce   :  { %vm676_vm2 = vcmp.gt.f32.partialorder %v660_v39, 0.0  ;;  %v684_v42 = vmul.f32 0.2, %v660_v39 }
 0x2cf   :  { %v549_v45 = vadd.f32 %v541_v40, %v501_v36 }
 0x2d0   :  { %v692_v47 = vsel %vm676_vm2, %v660_v39, %v684_v42 }
 0x2d1   :  { %v563_v49 = vsel %vm278_vm4, %v549_v45, 0.0  ;;  %v716_v50 = vsel %vm708_vm3, %v692_v47, -9e+15 }
 0x2d2   :  { %v564_v53 = vadd.f32 %v563_v49, %v562_v46  ;;  %v726_v32 = vsel %vm278_vm4, %v716_v50, -inf }
 0x2d3   :  { %727 = vmax.xlane.f32.xlu1 %v726_v32 }
 0x2d4   :  { %v565_v56 = vrot.slane %v564_v53, 4  ;;  %v592_v57 = vpop.permute.xlu1 %591 }
 0x2d5   :  { %v661_v58 = vsel %vm409_vm11, %v592_v57, %v632_v51 }
 0x2d6   :  { %v566_v59 = vadd.f32 %v565_v56, %v564_v53  ;;  %vm677_vm5 = vcmp.gt.f32.partialorder %v661_v58, 0.0  ;;  %v685_v60 = vmul.f32 0.2, %v661_v58 }
 0x2d8   :  { %v567_v61 = vrot.slane %v566_v59, 2  ;;  %v693_v62 = vsel %vm677_vm5, %v661_v58, %v685_v60 }
 0x2d9   :  { %v717_v63 = vsel %vm709_vm6, %v693_v62, -9e+15 }
 0x2da   :  { %v568_v0 = vadd.f32 %v567_v61, %v566_v59  ;;  %v729_v1 = vsel %vm278_vm4, %v717_v63, -inf }
 0x2db   :  { %730 = vmax.xlane.f32.xlu2 %v729_v1 }
 0x2dc   :  { %v569_v5 = vrot.slane %v568_v0, 1  ;;  %v597_v6 = vpop.permute.xlu1 %596 }
 0x2dd   :  { %v662_v8 = vsel %vm409_vm11, %v597_v6, %v637_v4  ;;  %vm713_vm11 = vcmp.gt.f32.partialorder %v705_v37, 0.0 }
 0x2de   :  { %vm678_vm7 = vcmp.gt.f32.partialorder %v662_v8, 0.0  ;;  %v686_v10 = vmul.f32 0.2, %v662_v8  ;;  %v570_v11 = vadd.f32 %v569_v5, %v568_v0 }
 0x2e0   :  { %v694_v12 = vsel %vm678_vm7, %v662_v8, %v686_v10  ;;  %vm679_vm10 = vcmp.gt.f32.partialorder %v570_v11, 0.0  ;;  %v687_v13 = vmul.f32 0.2, %v570_v11 }
 0x2e1   :  { %v718_v14 = vsel %vm710_vm8, %v694_v12, -9e+15 }
 0x2e2   :  { %v732_v15 = vsel %vm278_vm4, %v718_v14, -inf  ;;  %v695_v16 = vsel %vm679_vm10, %v570_v11, %v687_v13 }
 0x2e3   :  { %733 = vmax.xlane.f32.xlu2 %v732_v15  ;;  %v720_v17 = vsel %vm712_vm9, %v695_v16, -9e+15  ;;  %v719_v18 = vsel %vm711_vm12, %v695_v16, -9e+15  ;;  %v721_v20 = vsel %vm713_vm11, %v695_v16, -9e+15 }
 0x2e4   :  { %v738_v21 = vsel %vm278_vm4, %v720_v17, -inf  ;;  %v735_v23 = vsel %vm278_vm4, %v719_v18, -inf  ;;  %v722_v24 = vsel %vm714_vm13, %v695_v16, -9e+15  ;;  %v741_v27 = vsel %vm278_vm4, %v721_v20, -inf }
 0x2e5   :  { %739 = vmax.xlane.f32.xlu1 %v738_v21  ;;  %736 = vmax.xlane.f32.xlu0 %v735_v23  ;;  %v744_v29 = vsel %vm278_vm4, %v722_v24, -inf }
 0x2eb   :  { %742 = vmax.xlane.f32.xlu2 %v741_v27 }
 0x2ed   :  { %745 = vmax.xlane.f32.xlu1 %v744_v29 }
 0x33d   :  { %v725_v26 = vpop.xlane.xlu0 %724 }
 0x33e   :  { %v747_v22 = vsub.f32 %v1443_v25, %v725_v26 }
 0x340   :  { %v755_v30 = vmul.f32 1.442695, %v747_v22 }
 0x342   :  { %1145 = vpow2.f32 %v755_v30 }
 0x346   :  { %v728_v31 = vpop.xlane.xlu1 %727 }
 0x347   :  { %v748_v28 = vsub.f32 %v716_v50, %v728_v31 }
 0x348   :  { %v1489_v33 = vpop.eup %1145 }
 0x349   :  { %v757_v34 = vmul.f32 1.442695, %v748_v28  ;;  %v771_v35 = vsel %vm278_vm4, %v1489_v33, 0.0 }
 0x34a   :  { %772 = vadd.xlane.f32.xlu0 %v771_v35 }
 0x34b   :  { %1147 = vpow2.f32 %v757_v34 }
 0x34e   :  { %v731_v36 = vpop.xlane.xlu2 %730 }
 0x34f   :  { %v749_v38 = vsub.f32 %v717_v63, %v731_v36 }
 0x351   :  { %v1493_v39 = vpop.eup %1147  ;;  %v759_v40 = vmul.f32 1.442695, %v749_v38 }
 0x352   :  { %v774_v25 = vsel %vm278_vm4, %v1493_v39, 0.0 }
 0x353   :  { %1149 = vpow2.f32 %v759_v40  ;;  %775 = vadd.xlane.f32.xlu2 %v774_v25 }
 0x356   :  { %v734_v41 = vpop.xlane.xlu2 %733 }
 0x357   :  { %v750_v42 = vsub.f32 %v718_v14, %v734_v41 }
 0x358   :  { %v740_v45 = vpop.xlane.xlu1 %739  ;;  %v737_v46 = vpop.xlane.xlu0 %736 }
 0x359   :  { %v1497_v47 = vpop.eup %1149  ;;  %v761_v49 = vmul.f32 1.442695, %v750_v42  ;;  %v752_v50 = vsub.f32 %v720_v17, %v740_v45  ;;  %v751_v51 = vsub.f32 %v719_v18, %v737_v46  ;;  %v218_v42 = vmul.u32 2, %v1397_v43 }
 0x35a   :  { %v777_v53 = vsel %vm278_vm4, %v1497_v47, 0.0 }
 0x35b   :  { %1151 = vpow2.f32 %v761_v49  ;;  %v765_v32 = vmul.f32 1.442695, %v752_v50  ;;  %v763_v54 = vmul.f32 1.442695, %v751_v51  ;;  %778 = vadd.xlane.f32.xlu0 %v777_v53  ;;  %vm226_vm10 = vcmp.eq.s32.totalorder %v1318_v48, %v218_v42 }
 0x35c   :  { %v250_v53 = vadd.s32 1, %v218_v42 }
 0x35d   :  { %1153 = vpow2.f32 %v765_v32 }
 0x35e   :  { %1155 = vpow2.f32 %v763_v54  ;;  %v743_v56 = vpop.xlane.xlu2 %742  ;;  %vm258_vm13 = vcmp.eq.s32.totalorder %v1318_v48, %v250_v53 }
 0x35f   :  { %v753_v57 = vsub.f32 %v721_v20, %v743_v56 }
 0x360   :  { %v746_v58 = vpop.xlane.xlu1 %745 }
 0x361   :  { %v1501_v59 = vpop.eup %1151  ;;  %v767_v60 = vmul.f32 1.442695, %v753_v57  ;;  %v754_v61 = vsub.f32 %v722_v24, %v746_v58 }
 0x362   :  { %v780_v62 = vsel %vm278_vm4, %v1501_v59, 0.0 }
 0x363   :  { %v1505_v63 = vpop.eup %1153  ;;  %1157 = vpow2.f32 %v767_v60  ;;  %v769_v0 = vmul.f32 1.442695, %v754_v61  ;;  %781 = vadd.xlane.f32.xlu1 %v780_v62 }
 0x364   :  { %v1507_v1 = vpop.eup %1155  ;;  %v786_v3 = vsel %vm278_vm4, %v1505_v63, 0.0 }
 0x365   :  { %1159 = vpow2.f32 %v769_v0  ;;  %787 = vadd.xlane.f32.xlu0 %v786_v3  ;;  %v783_v4 = vsel %vm278_vm4, %v1507_v1, 0.0 }
 0x366   :  { %784 = vadd.xlane.f32.xlu2 %v783_v4 }
 0x369   :  { %v1513_v5 = vpop.eup %1157 }
 0x36a   :  { %v789_v6 = vsel %vm278_vm4, %v1513_v5, 0.0 }
 0x36b   :  { %v1517_v7 = vpop.eup %1159  ;;  %790 = vadd.xlane.f32.xlu1 %v789_v6 }
 0x36c   :  { %v792_v8 = vsel %vm278_vm4, %v1517_v7, 0.0 }
 0x36e   :  { %793 = vadd.xlane.f32.xlu2 %v792_v8 }
 0x3bd   :  { %v773_v9 = vpop.xlane.xlu0 %772 }
 0x3be   :  { %1161 = vrcp.f32 %v773_v9  ;;  %v806_v14 = vand.u32 2147483648, %v773_v9  ;;  %v804_v15 = vand.u32 2147483647, %v773_v9  ;;  %vm800_vm15 = vweird.f32 %v773_v9 }
 0x3c0   :  { %v807_v17 = vor.u32 1.1754944e-38, %v806_v14  ;;  %vm805_vm2 = vcmp.eq.f32.partialorder %v804_v15, 8.507059e+37 }
 0x3c4   :  { %v1162_v10 = vpop.eup %1161 }
 0x3c5   :  { %v796_v11 = vmul.f32 %v1162_v10, %v773_v9  ;;  %vm801_vm14 = vweird.f32 %v1162_v10 }
 0x3c6   :  { %v776_v12 = vpop.xlane.xlu2 %775  ;;  %vm802_vm0 = vmor %vm800_vm15, %vm801_vm14 }
 0x3c7   :  { %v797_v13 = vsub.f32 1.0, %v796_v11  ;;  %1163 = vrcp.f32 %v776_v12  ;;  %v821_v29 = vand.u32 2147483648, %v776_v12  ;;  %v819_v22 = vand.u32 2147483647, %v776_v12 }
 0x3c8   :  { %vm815_vm5 = vweird.f32 %v776_v12  ;;  %v1068_v11 = vsel %vm258_vm13, 1.0, %v1196_v55 }
 0x3c9   :  { %v798_v37 = vmul.f32 %v1162_v10, %v797_v13  ;;  %v822_v28 = vor.u32 1.1754944e-38, %v821_v29  ;;  %vm820_vm7 = vcmp.eq.f32.partialorder %v819_v22, 8.507059e+37  ;;  %1084 = vmatmul.msk.f32.gmra.mxu3 %vm278_vm4, %v1068_v11 }
 0x3cb   :  { %v799_v16 = vadd.f32 %v1162_v10, %v798_v37 }
 0x3cd   :  { %v1164_v18 = vpop.eup %1163  ;;  %v803_v19 = vsel %vm802_vm0, %v1162_v10, %v799_v16 }
 0x3ce   :  { %v811_v21 = vmul.f32 %v1164_v18, %v776_v12  ;;  %v779_v23 = vpop.xlane.xlu0 %778  ;;  %v808_v20 = vsel %vm805_vm2, %v807_v17, %v803_v19  ;;  %vm816_vm3 = vweird.f32 %v1164_v18  ;;  %v219_v12 = vmul.u32 2, %v1400_v44 }
 0x3cf   :  { %1165 = vrcp.f32 %v779_v23  ;;  %v809_v24 = vmul.f32 %v1489_v33, %v808_v20  ;;  %vm817_vm6 = vmor %vm815_vm5, %vm816_vm3  ;;  %v836_v46 = vand.u32 2147483648, %v779_v23  ;;  %v834_v49 = vand.u32 2147483647, %v779_v23 }
 0x3d0   :  { %v812_v27 = vsub.f32 1.0, %v811_v21  ;;  %vm830_vm9 = vweird.f32 %v779_v23  ;;  %vm227_vm5 = vcmp.eq.s32.totalorder %v1318_v48, %v219_v12 }
 0x3d1   :  { %1105 = vmatmul.msk.f32.vlgmr.msrb.gmra.mxu1 %vm278_vm4, %v809_v24  ;;  %v837_v32 = vor.u32 1.1754944e-38, %v836_v46  ;;  %vm835_vm11 = vcmp.eq.f32.partialorder %v834_v49, 8.507059e+37 }
 0x3d2   :  { %v813_v26 = vmul.f32 %v1164_v18, %v812_v27 }
 0x3d4   :  { %v814_v30 = vadd.f32 %v1164_v18, %v813_v26  ;;  %v220_v26 = vmul.u32 2, %v1405_v52 }
 0x3d5   :  { %v1166_v31 = vpop.eup %1165 }
 0x3d6   :  { %v826_v34 = vmul.f32 %v1166_v31, %v779_v23  ;;  %v782_v35 = vpop.xlane.xlu1 %781  ;;  %v818_v36 = vsel %vm817_vm6, %v1164_v18, %v814_v30  ;;  %vm831_vm8 = vweird.f32 %v1166_v31  ;;  %v251_v18 = vadd.s32 1, %v219_v12 }
 0x3d7   :  { %1167 = vrcp.f32 %v782_v35  ;;  %v823_v38 = vsel %vm820_vm7, %v822_v28, %v818_v36  ;;  %vm832_vm12 = vmor %vm830_vm9, %vm831_vm8  ;;  %v851_v61 = vand.u32 2147483648, %v782_v35  ;;  %v849_v4 = vand.u32 2147483647, %v782_v35 }
 0x3d8   :  { %v827_v40 = vsub.f32 1.0, %v826_v34  ;;  %v1523_v33 = vpop.xlane.xlu0 %787  ;;  %v824_v25 = vmul.f32 %v1493_v39, %v823_v38  ;;  %v1060_v39 = vsel %vm226_vm10, 1.0, %v1196_v55  ;;  %vm845_vm15 = vweird.f32 %v782_v35 }
 0x3d9   :  { %v1526_v41 = vpop.xlane.xlu2 %784  ;;  %1169 = vrcp.f32 %v1523_v33  ;;  %1076 = vmatmul.msk.f32.gmra.mxu2 %vm278_vm4, %v1060_v39  ;;  %vm850_vm2 = vcmp.eq.f32.partialorder %v849_v4, 8.507059e+37  ;;  %v1061_v23 = vsel %vm227_vm5, 1.0, %v1196_v55  ;;  %vm259_vm8 = vcmp.eq.s32.totalorder %v1318_v48, %v251_v18 }
 0x3da   :  { %v828_v45 = vmul.f32 %v1166_v31, %v827_v40  ;;  %1171 = vrcp.f32 %v1526_v41  ;;  %1106 = vmatmul.msk.f32.gmra.mxu1 %vm278_vm4, %v824_v25  ;;  %v866_v44 = vand.u32 2147483648, %v1526_v41  ;;  %vm860_vm6 = vweird.f32 %v1526_v41 }
 0x3db   :  { %v864_v20 = vand.u32 2147483647, %v1526_v41  ;;  %v1069_v29 = vsel %vm259_vm8, 1.0, %v1196_v55  ;;  %vm228_vm10 = vcmp.eq.s32.totalorder %v1318_v48, %v220_v26  ;;  %v252_v30 = vadd.s32 1, %v220_v26 }
 0x3dc   :  { %v829_v50 = vadd.f32 %v1166_v31, %v828_v45  ;;  %v867_v22 = vor.u32 1.1754944e-38, %v866_v44  ;;  %1085 = vmatmul.msk.f32.gmra.mxu3 %vm278_vm4, %v1069_v29  ;;  %v1062_v34 = vsel %vm228_vm10, 1.0, %v1196_v55  ;;  %v221_v36 = vmul.u32 2, %v1427_v2 }
 0x3dd   :  { %v1168_v51 = vpop.eup %1167  ;;  %vm865_vm9 = vcmp.eq.f32.partialorder %v864_v20, 8.507059e+37  ;;  %vm875_vm13 = vweird.f32 %v1523_v33  ;;  %v881_v38 = vand.u32 2147483648, %v1523_v33  ;;  %v879_v40 = vand.u32 2147483647, %v1523_v33 }
 0x3de   :  { %v841_v54 = vmul.f32 %v1168_v51, %v782_v35  ;;  %v833_v43 = vsel %vm832_vm12, %v1166_v31, %v829_v50  ;;  %v1537_v57 = vpop.xlane.xlu1 %790  ;;  %vm846_vm14 = vweird.f32 %v1168_v51  ;;  %v253_v46 = vadd.s32 1, %v221_v36 }
 0x3df   :  { %v1535_v56 = vpop.eup %1169  ;;  %v838_v62 = vsel %vm835_vm11, %v837_v32, %v833_v43  ;;  %1173 = vrcp.f32 %v1537_v57  ;;  %vm847_vm0 = vmor %vm845_vm15, %vm846_vm14  ;;  %vm260_vm11 = vcmp.eq.s32.totalorder %v1318_v48, %v252_v30  ;;  %vm229_vm15 = vcmp.eq.s32.totalorder %v1318_v48, %v221_v36 }
 0x3e0   :  { %v1172_v58 = vpop.eup %1171  ;;  %v842_v60 = vsub.f32 1.0, %v841_v54  ;;  %v839_v3 = vmul.f32 %v1497_v47, %v838_v62  ;;  %v871_v8 = vmul.f32 %v1535_v56, %v1523_v33  ;;  %v852_v47 = vor.u32 1.1754944e-38, %v851_v61 }
 0x3e1   :  { %v856_v0 = vmul.f32 %v1172_v58, %v1526_v41  ;;  %vm861_vm3 = vweird.f32 %v1172_v58  ;;  %v1549_v15 = vpop.xlane.xlu2 %793  ;;  %1077 = vmatmul.msk.f32.gmra.mxu2 %vm278_vm4, %v1061_v23  ;;  %vm876_vm12 = vweird.f32 %v1535_v56  ;;  %v1070_v42 = vsel %vm260_vm11, 1.0, %v1196_v55 }
 0x3e2   :  { %v843_v6 = vmul.f32 %v1168_v51, %v842_v60  ;;  %1107 = vmatmul.msk.f32.gmra.mxu1 %vm278_vm4, %v839_v3  ;;  %v872_v14 = vsub.f32 1.0, %v871_v8  ;;  %1175 = vrcp.f32 %v1549_v15  ;;  %vm862_vm7 = vmor %vm860_vm6, %vm861_vm3  ;;  %v882_v49 = vor.u32 1.1754944e-38, %v881_v38 }
 0x3e3   :  { %v857_v9 = vsub.f32 1.0, %v856_v0  ;;  %vm877_vm14 = vmor %vm875_vm13, %vm876_vm12  ;;  %v1063_v33 = vsel %vm229_vm15, 1.0, %v1196_v55  ;;  %vm261_vm3 = vcmp.eq.s32.totalorder %v1318_v48, %v253_v46  ;;  %v896_v39 = vand.u32 2147483648, %v1537_v57 }
 0x3e4   :  { %v844_v10 = vadd.f32 %v1168_v51, %v843_v6  ;;  %v873_v24 = vmul.f32 %v1535_v56, %v872_v14  ;;  %1086 = vmatmul.msk.f32.gmra.mxu3 %vm278_vm4, %v1070_v42  ;;  %vm890_vm5 = vweird.f32 %v1537_v57  ;;  %v894_v53 = vand.u32 2147483647, %v1537_v57 }
 0x3e5   :  { %v858_v13 = vmul.f32 %v1172_v58, %v857_v9  ;;  %v1552_v19 = vpop.eup %1173  ;;  %v1071_v54 = vsel %vm261_vm3, 1.0, %v1196_v55 }
 0x3e6   :  { %v848_v37 = vsel %vm847_vm0, %v1168_v51, %v844_v10  ;;  %v886_v27 = vmul.f32 %v1552_v19, %v1537_v57  ;;  %v874_v31 = vadd.f32 %v1535_v56, %v873_v24  ;;  %vm880_vm0 = vcmp.eq.f32.partialorder %v879_v40, 8.507059e+37 }
 0x3e7   :  { %v853_v16 = vsel %vm850_vm2, %v852_v47, %v848_v37  ;;  %v859_v17 = vadd.f32 %v1172_v58, %v858_v13  ;;  %vm891_vm2 = vweird.f32 %v1552_v19  ;;  %v911_v57 = vand.u32 2147483648, %v1549_v15 }
 0x3e8   :  { %v854_v21 = vmul.f32 %v1501_v59, %v853_v16  ;;  %v887_v35 = vsub.f32 1.0, %v886_v27  ;;  %v1176_v52 = vpop.eup %1175  ;;  %v878_v41 = vsel %vm877_vm14, %v1535_v56, %v874_v31  ;;  %vm892_vm6 = vmor %vm890_vm5, %vm891_vm2 }
 0x3e9   :  { %v863_v59 = vsel %vm862_vm7, %v1172_v58, %v859_v17  ;;  %1078 = vmatmul.msk.f32.gmra.mxu2 %vm278_vm4, %v1062_v34  ;;  %v901_v2 = vmul.f32 %v1176_v52, %v1549_v15  ;;  %v897_v58 = vor.u32 1.1754944e-38, %v896_v39  ;;  %vm895_vm7 = vcmp.eq.f32.partialorder %v894_v53, 8.507059e+37 }
 0x3ea   :  { %1108 = vmatmul.msk.f32.gmra.mxu1 %vm278_vm4, %v854_v21  ;;  %v868_v28 = vsel %vm865_vm9, %v867_v22, %v863_v59  ;;  %v888_v45 = vmul.f32 %v1552_v19, %v887_v35  ;;  %vm906_vm8 = vweird.f32 %v1176_v52  ;;  %vm905_vm9 = vweird.f32 %v1549_v15 }
 0x3eb   :  { %v869_v25 = vmul.f32 %v1507_v1, %v868_v28  ;;  %v883_v1 = vsel %vm880_vm0, %v882_v49, %v878_v41  ;;  %v902_v51 = vsub.f32 1.0, %v901_v2  ;;  %vm907_vm10 = vmor %vm905_vm9, %vm906_vm8  ;;  %v912_v62 = vor.u32 1.1754944e-38, %v911_v57 }
 0x3ec   :  { %v889_v50 = vadd.f32 %v1552_v19, %v888_v45  ;;  %v884_v32 = vmul.f32 %v1505_v63, %v883_v1  ;;  %1087 = vmatmul.msk.f32.gmra.mxu3 %vm278_vm4, %v1071_v54  ;;  %v909_v63 = vand.u32 2147483647, %v1549_v15 }
 0x3ed   :  { %v903_v43 = vmul.f32 %v1176_v52, %v902_v51 }
 0x3ee   :  { %v893_v56 = vsel %vm892_vm6, %v1552_v19, %v889_v50  ;;  %vm910_vm12 = vcmp.eq.f32.partialorder %v909_v63, 8.507059e+37 }
 0x3ef   :  { %v898_v48 = vsel %vm895_vm7, %v897_v58, %v893_v56  ;;  %v904_v60 = vadd.f32 %v1176_v52, %v903_v43 }
 0x3f0   :  { %v899_v55 = vmul.f32 %v1513_v5, %v898_v48 }
 0x3f1   :  { %1079 = vmatmul.msk.f32.gmra.mxu2 %vm278_vm4, %v1063_v33  ;;  %v908_v61 = vsel %vm907_vm10, %v1176_v52, %v904_v60 }
 0x3f2   :  { %1109 = vmatmul.msk.f32.gmra.mxu1 %vm278_vm4, %v869_v25  ;;  %v913_v0 = vsel %vm910_vm12, %v912_v62, %v908_v61 }
 0x3f3   :  { %v914_v3 = vmul.f32 %v1517_v7, %v913_v0 }
 0x3fa   :  { %1110 = vmatmul.msk.f32.gmra.mxu1 %vm278_vm4, %v884_v32 }
 0x402   :  { %1111 = vmatmul.msk.f32.gmra.mxu1 %vm278_vm4, %v899_v55 }
 0x40a   :  { %1112 = vmatmul.msk.f32.gmra.mxu1 %vm278_vm4, %v914_v3 }
 0x44c   :  { %v397_v19 = vpop.f32.mrf.mxu3 }
 0x44e   :  { %v956_v4 = vpop.f32.mrf.mxu1 }
 0x44f   :  { %v988_v6 = vmin.f32 %v956_v4, 0.0  ;;  %vm980_vm11 = vcmp.gt.f32.partialorder %v956_v4, 0.0 }
 0x451   :  { %v996_v8 = vmul.f32 1.442695, %v988_v6 }
 0x453   :  { %1177 = vpow2.f32 %v996_v8 }
 0x457   :  { %v959_v9 = vpop.f32.mrf.mxu1 }
 0x458   :  { %v989_v10 = vmin.f32 %v959_v9, 0.0  ;;  %vm981_vm4 = vcmp.gt.f32.partialorder %v959_v9, 0.0 }
 0x459   :  { %v1178_v11 = vpop.eup %1177 }
 0x45a   :  { %v1113_v12 = vadd.f32 -1.0, %v1178_v11  ;;  %v998_v5 = vmul.f32 1.442695, %v989_v10 }
 0x45c   :  { %v1020_v47 = vsel %vm980_vm11, %v956_v4, %v1113_v12  ;;  %1179 = vpow2.f32 %v998_v5  ;;  %v332_v14 = vpop.f32.mrf.mxu2 }
 0x45d   :  { %1028 = vst.msk [vmem:[%s1644_s4] sm:$0xff] %vm97_vm1, %v1020_v47 }
 0x45f   :  { %v962_v7 = vpop.f32.mrf.mxu1  ;;  %v400_v29 = vpop.f32.mrf.mxu3 }
 0x460   :  { %v990_v13 = vmin.f32 %v962_v7, 0.0  ;;  %vm982_vm13 = vcmp.gt.f32.partialorder %v962_v7, 0.0 }
 0x462   :  { %v1180_v37 = vpop.eup %1179  ;;  %v1000_v16 = vmul.f32 1.442695, %v990_v13 }
 0x463   :  { %v1114_v15 = vadd.f32 -1.0, %v1180_v37 }
 0x464   :  { %1181 = vpow2.f32 %v1000_v16  ;;  %v335_v24 = vpop.f32.mrf.mxu2 }
 0x465   :  { %v1021_v17 = vsel %vm981_vm4, %v959_v9, %v1114_v15 }
 0x466   :  { %1029 = vst.msk [vmem:[%s1644_s4 + $0x8] sm:$0xff] %vm97_vm1, %v1021_v17 }
 0x467   :  { %v965_v18 = vpop.f32.mrf.mxu1  ;;  %v403_v36 = vpop.f32.mrf.mxu3 }
 0x468   :  { %v991_v44 = vmin.f32 %v965_v18, 0.0  ;;  %vm983_vm14 = vcmp.gt.f32.partialorder %v965_v18, 0.0 }
 0x46a   :  { %v1182_v21 = vpop.eup %1181  ;;  %v1002_v23 = vmul.f32 1.442695, %v991_v44 }
 0x46b   :  { %v1115_v20 = vadd.f32 -1.0, %v1182_v21 }
 0x46c   :  { %1183 = vpow2.f32 %v1002_v23  ;;  %v338_v28 = vpop.f32.mrf.mxu2 }
 0x46d   :  { %v1022_v27 = vsel %vm982_vm13, %v962_v7, %v1115_v20 }
 0x46e   :  { %1030 = vst.msk [vmem:[%s1644_s4 + $0x10] sm:$0xff] %vm97_vm1, %v1022_v27 }
 0x46f   :  { %v968_v59 = vpop.f32.mrf.mxu1  ;;  %v406_v2 = vpop.f32.mrf.mxu3 }
 0x470   :  { %v992_v26 = vmin.f32 %v968_v59, 0.0  ;;  %vm984_vm15 = vcmp.gt.f32.partialorder %v968_v59, 0.0 }
 0x472   :  { %v1184_v22 = vpop.eup %1183  ;;  %v1004_v30 = vmul.f32 1.442695, %v992_v26 }
 0x473   :  { %v1116_v31 = vadd.f32 -1.0, %v1184_v22 }
 0x474   :  { %1185 = vpow2.f32 %v1004_v30  ;;  %v341_v41 = vpop.f32.mrf.mxu2 }
 0x475   :  { %v1023_v34 = vsel %vm983_vm14, %v965_v18, %v1116_v31 }
 0x476   :  { %1031 = vst.msk [vmem:[%s1644_s4 + $0x18] sm:$0xff] %vm97_vm1, %v1023_v34 }
 0x477   :  { %v971_v35 = vpop.f32.mrf.mxu1 }
 0x478   :  { %v993_v52 = vmin.f32 %v971_v35, 0.0  ;;  %vm985_vm0 = vcmp.gt.f32.partialorder %v971_v35, 0.0 }
 0x47a   :  { %v1186_v38 = vpop.eup %1185  ;;  %v1006_v40 = vmul.f32 1.442695, %v993_v52 }
 0x47b   :  { %v1117_v25 = vadd.f32 -1.0, %v1186_v38 }
 0x47c   :  { %1187 = vpow2.f32 %v1006_v40 }
 0x47d   :  { %v1024_v42 = vsel %vm984_vm15, %v968_v59, %v1117_v25 }
 0x47e   :  { %1032 = vst.msk [vmem:[%s1644_s4 + $0x20] sm:$0xff] %vm97_vm1, %v1024_v42 }
 0x47f   :  { %v974_v45 = vpop.f32.mrf.mxu1 }
 0x480   :  { %v994_v46 = vmin.f32 %v974_v45, 0.0  ;;  %vm986_vm2 = vcmp.gt.f32.partialorder %v974_v45, 0.0 }
 0x482   :  { %v1188_v49 = vpop.eup %1187  ;;  %v1008_v1 = vmul.f32 1.442695, %v994_v46 }
 0x483   :  { %v1118_v33 = vadd.f32 -1.0, %v1188_v49 }
 0x484   :  { %1189 = vpow2.f32 %v1008_v1 }
 0x485   :  { %v1025_v50 = vsel %vm985_vm0, %v971_v35, %v1118_v33 }
 0x486   :  { %1033 = vst.msk [vmem:[%s1644_s4 + $0x28] sm:$0xff] %vm97_vm1, %v1025_v50 }
 0x487   :  { %v977_v51 = vpop.f32.mrf.mxu1 }
 0x488   :  { %v995_v39 = vmin.f32 %v977_v51, 0.0  ;;  %vm987_vm3 = vcmp.gt.f32.partialorder %v977_v51, 0.0 }
 0x48a   :  { %v1190_v53 = vpop.eup %1189  ;;  %v1010_v32 = vmul.f32 1.442695, %v995_v39 }
 0x48b   :  { %v1119_v54 = vadd.f32 -1.0, %v1190_v53 }
 0x48c   :  { %1191 = vpow2.f32 %v1010_v32 }
 0x48d   :  { %v1026_v43 = vsel %vm986_vm2, %v974_v45, %v1119_v54 }
 0x48e   :  { %1034 = vst.msk [vmem:[%s1644_s4 + $0x30] sm:$0xff] %vm97_vm1, %v1026_v43 }
 0x492   :  { %v1192_v56 = vpop.eup %1191 }
 0x493   :  { %v1120_v58 = vadd.f32 -1.0, %v1192_v56 }
 0x495   :  { %v1027_v48 = vsel %vm987_vm3, %v977_v51, %v1120_v58 }
 0x496   :  { %1035 = vst.msk [vmem:[%s1644_s4 + $0x38] sm:$0xff] %vm97_vm1, %v1027_v48 }

</bundles_post_ra>
